<compile_context>
chip_gen: v5e
topology: v5e:2x2
jax: 0.10.0
libtpu: 0.0.40
codegen_flags: <defaults>
</compile_context>

<pallas_src>
import jax
import jax.numpy as jnp
from jax.experimental import pallas as pl
from jax.experimental.pallas import tpu as pltpu


def _pick_tile(dim, target, align):
    """Largest multiple of `align` <= target that divides `dim`, else full dim."""
    if dim <= target:
        return dim
    t = (target // align) * align
    while t >= align:
        if dim % t == 0:
            return t
        t -= align
    return dim


def _pick_m_tile(batch):
    """M-tile: single tile for tiny batches; >=2 tiles (multiples of 8) otherwise."""
    if batch < 32:
        return batch  # one tile — don't force a megacore split for tiny B
    target = min(256, max(8, (batch // 2) // 8 * 8))
    return _pick_tile(batch, target, 8)


def _encoder_kernel(a_ref, f_ref, wa_ref, wf_ref, b_ref, o_ref):
    # Both full-K dots in one step; f32 accumulation via preferred_element_type.
    # (Default MXU f32 precision is within the test tolerance; pass
    #  precision=jax.lax.Precision.HIGHEST here if tighter accuracy is needed.)
    acc = jnp.dot(a_ref[...], wa_ref[...], preferred_element_type=jnp.float32)
    acc = acc + jnp.dot(f_ref[...], wf_ref[...],
                        preferred_element_type=jnp.float32)
    o_ref[...] = (acc + b_ref[...]).astype(o_ref.dtype)


def prepare_encoder_params(weight, bias, split_dim):
    """One-time prep (outside the hot forward path): split + transpose.

    weight: (O, Da+Df) torch nn.Linear layout.  bias: (O,).  split_dim = Da.
    Returns (w_a (Da, O), w_f (Df, O), bias2d (1, O)).  No padding.
    """
    out_dim, in_dim = weight.shape
    assert 0 < split_dim < in_dim, "both feature halves must be non-empty"
    w_t = jnp.asarray(weight).T  # (in_dim, out_dim)
    w_a = w_t[:split_dim]
    w_f = w_t[split_dim:]
    b2d = jnp.asarray(bias).reshape(1, out_dim)
    return w_a, w_f, b2d


def encoder_forward(afeat, ffeat, w_a, w_f, bias2d):
    """Equivalent of Encoder.forward(afeat, ffeat) -> (B, out_dim)."""
    B, Da = afeat.shape
    Bf, Df = ffeat.shape
    assert B == Bf, "batch mismatch between afeat and ffeat"
    assert Da > 0 and Df > 0, "both feature halves must be non-empty"
    assert Da == w_a.shape[0] and Df == w_f.shape[0], "weight split mismatch"
    O = w_a.shape[1]

    tm = _pick_m_tile(B)
    assert B % tm == 0
    grid = (B // tm,)

    itemsize = jnp.dtype(afeat.dtype).itemsize
    cost = pl.CostEstimate(
        flops=2 * B * (Da + Df) * O,
        transcendentals=0,
        bytes_accessed=itemsize * (B * (Da + Df) + (Da + Df) * O + O + B * O),
    )

    return pl.pallas_call(
        _encoder_kernel,
        out_shape=jax.ShapeDtypeStruct((B, O), afeat.dtype),
        grid=grid,
        in_specs=[
            # Activations: streamed per M tile.
            pl.BlockSpec((tm, Da), lambda m: (m, 0)),
            pl.BlockSpec((tm, Df), lambda m: (m, 0)),
            # Split weights + bias: constant block index -> DMA'd once,
            # VMEM-resident across all M tiles.
            pl.BlockSpec((Da, O), lambda m: (0, 0)),
            pl.BlockSpec((Df, O), lambda m: (0, 0)),
            pl.BlockSpec((1, O), lambda m: (0, 0)),
        ],
        out_specs=pl.BlockSpec((tm, O), lambda m: (m, 0)),
        compiler_params=pltpu.CompilerParams(
            dimension_semantics=("parallel",),
            vmem_limit_bytes=32 * 1024 * 1024,  # safe on v7x (64 MiB physical)
        ),
        cost_estimate=cost,
    )(afeat, ffeat, w_a, w_f, bias2d)


if __name__ == "__main__":
    key = jax.random.PRNGKey(0)
    k_a, k_f, k_w, k_b = jax.random.split(key, 4)

    # Shapes consistent with Encoder(input_dim=2816, out_dim=8): the two
    # feature halves concat to 2816, small batch.
    B, Da, Df, out_dim = 16, 1408, 1408, 8
    input_dim = Da + Df

    afeat = jax.random.normal(k_a, (B, Da), dtype=jnp.float32)
    ffeat = jax.random.normal(k_f, (B, Df), dtype=jnp.float32)

    # Deterministic synthetic Linear params (torch layout: weight (O, D), bias (O,)).
    bound = 1.0 / (input_dim ** 0.5)
    weight = jax.random.uniform(k_w, (out_dim, input_dim), minval=-bound,
                                maxval=bound, dtype=jnp.float32)
    bias = jax.random.uniform(k_b, (out_dim,), minval=-bound, maxval=bound,
                              dtype=jnp.float32)

    # One-time param prep (split + transpose), outside the hot path.
    w_a, w_f, b2d = prepare_encoder_params(weight, bias, Da)

    fwd = jax.jit(encoder_forward)
    out = fwd(afeat, ffeat, w_a, w_f, b2d)
    jax.block_until_ready(out)

    # Reference in plain JAX (torch semantics: cat along dim=1, then Linear).
    feat = jnp.concatenate([afeat, ffeat], axis=1)
    ref = jnp.dot(feat, weight.T, precision=jax.lax.Precision.HIGHEST) + bias

    assert out.shape == (B, out_dim)
    assert jnp.allclose(out, ref, atol=2e-3, rtol=2e-3), \
        float(jnp.max(jnp.abs(out - ref)))

    print("KERNEL_OK")
</pallas_src>

<mosaic_0001>
module attributes {stable_mosaic.version = 11 : i64} {
  func.func @_encoder_kernel(%arg0: i32, %arg1: memref<16x1408xf32, #tpu.memory_space<vmem>>, %arg2: memref<16x1408xf32, #tpu.memory_space<vmem>>, %arg3: memref<1408x8xf32, #tpu.memory_space<vmem>>, %arg4: memref<1408x8xf32, #tpu.memory_space<vmem>>, %arg5: memref<1x8xf32, #tpu.memory_space<vmem>>, %arg6: memref<16x8xf32, #tpu.memory_space<vmem>>) attributes {dimension_semantics = [#tpu.dimension_semantics<parallel>], iteration_bounds = array<i64: 1>, scalar_prefetch = 0 : i64, scratch_operands = 0 : i64, tpu.core_type = #tpu.core_type<tc>, window_params = [{transform_indices = @transform_0, window_bounds = array<i64: 16, 1408>}, {transform_indices = @transform_1, window_bounds = array<i64: 16, 1408>}, {pipeline_mode = #tpu.pipeline_mode<synchronous>, transform_indices = @transform_2, window_bounds = array<i64: 1408, 8>}, {pipeline_mode = #tpu.pipeline_mode<synchronous>, transform_indices = @transform_3, window_bounds = array<i64: 1408, 8>}, {pipeline_mode = #tpu.pipeline_mode<synchronous>, transform_indices = @transform_4, window_bounds = array<i64: 1, 8>}, {transform_indices = @transform_5, window_bounds = array<i64: 16, 8>}]} {
    %c0 = arith.constant 0 : index
    %c0_0 = arith.constant 0 : index
    %0 = vector.load %arg1[%c0, %c0_0] : memref<16x1408xf32, #tpu.memory_space<vmem>>, vector<16x1408xf32>
    %c0_1 = arith.constant 0 : index
    %c0_2 = arith.constant 0 : index
    %1 = vector.load %arg3[%c0_1, %c0_2] : memref<1408x8xf32, #tpu.memory_space<vmem>>, vector<1408x8xf32>
    %cst = arith.constant dense<0.000000e+00> : vector<16x8xf32>
    %2 = tpu.matmul %0, %1, %cst {dimension_numbers = #tpu.dot_dimension_numbers<[1], [0], [0], [1], [0, 0, 1, 1], [], []>} : vector<16x1408xf32>, vector<1408x8xf32>, vector<16x8xf32> -> vector<16x8xf32>
    %c0_3 = arith.constant 0 : index
    %c0_4 = arith.constant 0 : index
    %3 = vector.load %arg2[%c0_3, %c0_4] : memref<16x1408xf32, #tpu.memory_space<vmem>>, vector<16x1408xf32>
    %c0_5 = arith.constant 0 : index
    %c0_6 = arith.constant 0 : index
    %4 = vector.load %arg4[%c0_5, %c0_6] : memref<1408x8xf32, #tpu.memory_space<vmem>>, vector<1408x8xf32>
    %cst_7 = arith.constant dense<0.000000e+00> : vector<16x8xf32>
    %5 = tpu.matmul %3, %4, %cst_7 {dimension_numbers = #tpu.dot_dimension_numbers<[1], [0], [0], [1], [0, 0, 1, 1], [], []>} : vector<16x1408xf32>, vector<1408x8xf32>, vector<16x8xf32> -> vector<16x8xf32>
    %6 = arith.addf %2, %5 : vector<16x8xf32>
    %c0_8 = arith.constant 0 : index
    %c0_9 = arith.constant 0 : index
    %7 = vector.load %arg5[%c0_8, %c0_9] : memref<1x8xf32, #tpu.memory_space<vmem>>, vector<1x8xf32>
    %8 = vector.broadcast %7 : vector<1x8xf32> to vector<16x8xf32>
    %9 = arith.addf %6, %8 : vector<16x8xf32>
    %c0_10 = arith.constant 0 : index
    %c0_11 = arith.constant 0 : index
    %10 = vector.load %arg6[%c0_10, %c0_11] : memref<16x8xf32, #tpu.memory_space<vmem>>, vector<16x8xf32>
    tpu.vector_store %arg6[%c0_10, %c0_11], %9 {strides = array<i32>} : memref<16x8xf32, #tpu.memory_space<vmem>>, vector<16x8xf32>,
    return
  }
  func.func @transform_0(%arg0: i32) -> (i32, i32) {
    %c0_i32 = arith.constant 0 : i32
    %c0_i32_0 = arith.constant 0 : i32
    return %arg0, %c0_i32 : i32, i32
  }
  func.func @transform_1(%arg0: i32) -> (i32, i32) {
    %c0_i32 = arith.constant 0 : i32
    %c0_i32_0 = arith.constant 0 : i32
    return %arg0, %c0_i32 : i32, i32
  }
  func.func @transform_2(%arg0: i32) -> (i32, i32) {
    %c0_i32 = arith.constant 0 : i32
    %c0_i32_0 = arith.constant 0 : i32
    %c0_i32_1 = arith.constant 0 : i32
    return %c0_i32, %c0_i32_0 : i32, i32
  }
  func.func @transform_3(%arg0: i32) -> (i32, i32) {
    %c0_i32 = arith.constant 0 : i32
    %c0_i32_0 = arith.constant 0 : i32
    %c0_i32_1 = arith.constant 0 : i32
    return %c0_i32, %c0_i32_0 : i32, i32
  }
  func.func @transform_4(%arg0: i32) -> (i32, i32) {
    %c0_i32 = arith.constant 0 : i32
    %c0_i32_0 = arith.constant 0 : i32
    %c0_i32_1 = arith.constant 0 : i32
    return %c0_i32, %c0_i32_0 : i32, i32
  }
  func.func @transform_5(%arg0: i32) -> (i32, i32) {
    %c0_i32 = arith.constant 0 : i32
    %c0_i32_0 = arith.constant 0 : i32
    return %arg0, %c0_i32 : i32, i32
  }
}

</mosaic_0001>

<bundles_post_ra>
// kernel: encoder_forward.1
= control target key start
LH: loop header
LB: loop body
LE: loop exit
PB: predicated region body
PF: predicated region fallthrough
CT: control target
= control target key end

     0   :  { %vm928_vm0 = vcmask 64512   ;;  %s2195_s3 = inlined_call_operand.vmem [shape: f32[1408,8], index: 3, kind: input, shape index: {}]   ;;  %s2196_s1 = inlined_call_operand.vmem [shape: f32[16,1408], index: 1, kind: input, shape index: {}]   ;;  %s2197_s2 = inlined_call_operand.vmem [shape: f32[1408,8], index: 2, kind: input, shape index: {}]   ;;  %s2198_s0 = inlined_call_operand.vmem [shape: f32[16,1408], index: 0, kind: input, shape index: {}]   ;;  %s2199_s4 = inlined_call_operand.vmem [shape: f32[1,8], index: 4, kind: input, shape index: {}]   ;;  %s2200_s5 = inlined_call_operand.vmem [shape: f32[16,8], index: 5, kind: output, shape index: {}]  }
   0x1   :  { %v255_v0 = vld [vmem:[%s2195_s3 + $0x78] sm:$0xff]  ;;  %v254_v2 = vld [vmem:[%s2195_s3 + $0x70] sm:$0xff]  ;;  %v253_v6 = vld [vmem:[%s2195_s3 + $0x68] sm:$0xff] }
   0x2   :  { %v287_v1 = vld [vmem:[%s2195_s3 + $0x178] sm:$0xff]  ;;  %416 = vmatpush.msra.mxu0 %v255_v0  ;;  %v286_v4 = vld [vmem:[%s2195_s3 + $0x170] sm:$0xff]  ;;  %v285_v8 = vld [vmem:[%s2195_s3 + $0x168] sm:$0xff] }
   0x3   :  { %462 = vmatpush.msra.mxu2 %v287_v1  ;;  %v271_v3 = vld [vmem:[%s2195_s3 + $0xf8] sm:$0xff]  ;;  %v270_v7 = vld [vmem:[%s2195_s3 + $0xf0] sm:$0xff]  ;;  %v269_v10 = vld [vmem:[%s2195_s3 + $0xe8] sm:$0xff] }
   0x4   :  { %v303_v5 = vld [vmem:[%s2195_s3 + $0x1f8] sm:$0xff]  ;;  %439 = vmatpush.msra.mxu1 %v271_v3  ;;  %417 = vmatpush.msra.mxu0 %v254_v2  ;;  %v302_v9 = vld [vmem:[%s2195_s3 + $0x1f0] sm:$0xff]  ;;  %v252_v11 = vld [vmem:[%s2195_s3 + $0x60] sm:$0xff] }
   0x5   :  { %485 = vmatpush.msra.mxu3 %v303_v5  ;;  %463 = vmatpush.msra.mxu2 %v286_v4  ;;  %v284_v12 = vld [vmem:[%s2195_s3 + $0x160] sm:$0xff]  ;;  %v301_v13 = vld [vmem:[%s2195_s3 + $0x1e8] sm:$0xff]  ;;  %v251_v16 = vld [vmem:[%s2195_s3 + $0x58] sm:$0xff] }
   0x6   :  { %440 = vmatpush.msra.mxu1 %v270_v7  ;;  %418 = vmatpush.msra.mxu0 %v253_v6  ;;  %v268_v14 = vld [vmem:[%s2195_s3 + $0xe0] sm:$0xff]  ;;  %v283_v17 = vld [vmem:[%s2195_s3 + $0x158] sm:$0xff]  ;;  %v250_v20 = vld [vmem:[%s2195_s3 + $0x50] sm:$0xff] }
   0x7   :  { %486 = vmatpush.msra.mxu3 %v302_v9  ;;  %464 = vmatpush.msra.mxu2 %v285_v8  ;;  %v300_v15 = vld [vmem:[%s2195_s3 + $0x1e0] sm:$0xff]  ;;  %v267_v18 = vld [vmem:[%s2195_s3 + $0xd8] sm:$0xff]  ;;  %v282_v21 = vld [vmem:[%s2195_s3 + $0x150] sm:$0xff] }
   0x8   :  { %441 = vmatpush.msra.mxu1 %v269_v10  ;;  %419 = vmatpush.msra.mxu0 %v252_v11  ;;  %v299_v19 = vld [vmem:[%s2195_s3 + $0x1d8] sm:$0xff]  ;;  %v266_v22 = vld [vmem:[%s2195_s3 + $0xd0] sm:$0xff]  ;;  %v249_v24 = vld [vmem:[%s2195_s3 + $0x48] sm:$0xff] }
   0x9   :  { %487 = vmatpush.msra.mxu3 %v301_v13  ;;  %465 = vmatpush.msra.mxu2 %v284_v12  ;;  %v298_v23 = vld [vmem:[%s2195_s3 + $0x1d0] sm:$0xff]  ;;  %v281_v25 = vld [vmem:[%s2195_s3 + $0x148] sm:$0xff]  ;;  %v248_v28 = vld [vmem:[%s2195_s3 + $0x40] sm:$0xff] }
   0xa   :  { %442 = vmatpush.msra.mxu1 %v268_v14  ;;  %420 = vmatpush.msra.mxu0 %v251_v16  ;;  %v265_v26 = vld [vmem:[%s2195_s3 + $0xc8] sm:$0xff]  ;;  %v280_v29 = vld [vmem:[%s2195_s3 + $0x140] sm:$0xff]  ;;  %v247_v32 = vld [vmem:[%s2195_s3 + $0x38] sm:$0xff] }
   0xb   :  { %488 = vmatpush.msra.mxu3 %v300_v15  ;;  %466 = vmatpush.msra.mxu2 %v283_v17  ;;  %v297_v27 = vld [vmem:[%s2195_s3 + $0x1c8] sm:$0xff]  ;;  %v264_v30 = vld [vmem:[%s2195_s3 + $0xc0] sm:$0xff]  ;;  %v279_v33 = vld [vmem:[%s2195_s3 + $0x138] sm:$0xff] }
   0xc   :  { %443 = vmatpush.msra.mxu1 %v267_v18  ;;  %421 = vmatpush.msra.mxu0 %v250_v20  ;;  %v296_v31 = vld [vmem:[%s2195_s3 + $0x1c0] sm:$0xff]  ;;  %v263_v34 = vld [vmem:[%s2195_s3 + $0xb8] sm:$0xff]  ;;  %v246_v36 = vld [vmem:[%s2195_s3 + $0x30] sm:$0xff] }
   0xd   :  { %489 = vmatpush.msra.mxu3 %v299_v19  ;;  %467 = vmatpush.msra.mxu2 %v282_v21  ;;  %v295_v35 = vld [vmem:[%s2195_s3 + $0x1b8] sm:$0xff]  ;;  %v278_v37 = vld [vmem:[%s2195_s3 + $0x130] sm:$0xff]  ;;  %v245_v40 = vld [vmem:[%s2195_s3 + $0x28] sm:$0xff] }
   0xe   :  { %444 = vmatpush.msra.mxu1 %v266_v22  ;;  %422 = vmatpush.msra.mxu0 %v249_v24  ;;  %v262_v38 = vld [vmem:[%s2195_s3 + $0xb0] sm:$0xff]  ;;  %v277_v41 = vld [vmem:[%s2195_s3 + $0x128] sm:$0xff]  ;;  %v244_v44 = vld [vmem:[%s2195_s3 + $0x20] sm:$0xff] }
   0xf   :  { %490 = vmatpush.msra.mxu3 %v298_v23  ;;  %468 = vmatpush.msra.mxu2 %v281_v25  ;;  %v294_v39 = vld [vmem:[%s2195_s3 + $0x1b0] sm:$0xff]  ;;  %v261_v42 = vld [vmem:[%s2195_s3 + $0xa8] sm:$0xff]  ;;  %v276_v45 = vld [vmem:[%s2195_s3 + $0x120] sm:$0xff] }
  0x10   :  { %445 = vmatpush.msra.mxu1 %v265_v26  ;;  %423 = vmatpush.msra.mxu0 %v248_v28  ;;  %v293_v43 = vld [vmem:[%s2195_s3 + $0x1a8] sm:$0xff]  ;;  %v260_v46 = vld [vmem:[%s2195_s3 + $0xa0] sm:$0xff]  ;;  %v243_v48 = vld [vmem:[%s2195_s3 + $0x18] sm:$0xff] }
  0x11   :  { %491 = vmatpush.msra.mxu3 %v297_v27  ;;  %469 = vmatpush.msra.mxu2 %v280_v29  ;;  %v292_v47 = vld [vmem:[%s2195_s3 + $0x1a0] sm:$0xff]  ;;  %v275_v49 = vld [vmem:[%s2195_s3 + $0x118] sm:$0xff]  ;;  %v242_v52 = vld [vmem:[%s2195_s3 + $0x10] sm:$0xff] }
  0x12   :  { %446 = vmatpush.msra.mxu1 %v264_v30  ;;  %424 = vmatpush.msra.mxu0 %v247_v32  ;;  %v259_v50 = vld [vmem:[%s2195_s3 + $0x98] sm:$0xff]  ;;  %v274_v53 = vld [vmem:[%s2195_s3 + $0x110] sm:$0xff]  ;;  %v241_v56 = vld [vmem:[%s2195_s3 + $0x8] sm:$0xff] }
  0x13   :  { %492 = vmatpush.msra.mxu3 %v296_v31  ;;  %470 = vmatpush.msra.mxu2 %v279_v33  ;;  %v291_v51 = vld [vmem:[%s2195_s3 + $0x198] sm:$0xff]  ;;  %v258_v54 = vld [vmem:[%s2195_s3 + $0x90] sm:$0xff]  ;;  %v273_v57 = vld [vmem:[%s2195_s3 + $0x108] sm:$0xff] }
  0x14   :  { %447 = vmatpush.msra.mxu1 %v263_v34  ;;  %425 = vmatpush.msra.mxu0 %v246_v36  ;;  %v290_v55 = vld [vmem:[%s2195_s3 + $0x190] sm:$0xff]  ;;  %v257_v58 = vld [vmem:[%s2195_s3 + $0x88] sm:$0xff]  ;;  %v240_v60 = vld [vmem:[%s2195_s3] sm:$0xff] }
  0x15   :  { %493 = vmatpush.msra.mxu3 %v295_v35  ;;  %471 = vmatpush.msra.mxu2 %v278_v37  ;;  %v289_v59 = vld [vmem:[%s2195_s3 + $0x188] sm:$0xff]  ;;  %v272_v61 = vld [vmem:[%s2195_s3 + $0x100] sm:$0xff]  ;;  %v319_v62 = vld [vmem:[%s2195_s3 + $0x278] sm:$0xff] }
  0x16   :  { %448 = vmatpush.msra.mxu1 %v262_v38  ;;  %426 = vmatpush.msra.mxu0 %v245_v40  ;;  %v351_v63 = vld [vmem:[%s2195_s3 + $0x378] sm:$0xff]  ;;  %v256_v0 = vld [vmem:[%s2195_s3 + $0x80] sm:$0xff]  ;;  %v318_v2 = vld [vmem:[%s2195_s3 + $0x270] sm:$0xff] }
  0x17   :  { %494 = vmatpush.msra.mxu3 %v294_v39  ;;  %472 = vmatpush.msra.mxu2 %v277_v41  ;;  %v288_v1 = vld [vmem:[%s2195_s3 + $0x180] sm:$0xff]  ;;  %v335_v3 = vld [vmem:[%s2195_s3 + $0x2f8] sm:$0xff]  ;;  %v350_v4 = vld [vmem:[%s2195_s3 + $0x370] sm:$0xff] }
  0x18   :  { %449 = vmatpush.msra.mxu1 %v261_v42  ;;  %427 = vmatpush.msra.mxu0 %v244_v44  ;;  %v367_v5 = vld [vmem:[%s2195_s3 + $0x3f8] sm:$0xff]  ;;  %v317_v6 = vld [vmem:[%s2195_s3 + $0x268] sm:$0xff]  ;;  %v334_v7 = vld [vmem:[%s2195_s3 + $0x2f0] sm:$0xff] }
  0x19   :  { %495 = vmatpush.msra.mxu3 %v293_v43  ;;  %473 = vmatpush.msra.mxu2 %v276_v45  ;;  %v349_v8 = vld [vmem:[%s2195_s3 + $0x368] sm:$0xff]  ;;  %v366_v9 = vld [vmem:[%s2195_s3 + $0x3f0] sm:$0xff]  ;;  %v316_v10 = vld [vmem:[%s2195_s3 + $0x260] sm:$0xff] }
  0x1a   :  { %450 = vmatpush.msra.mxu1 %v260_v46  ;;  %428 = vmatpush.msra.mxu0 %v243_v48  ;;  %v333_v11 = vld [vmem:[%s2195_s3 + $0x2e8] sm:$0xff]  ;;  %v348_v12 = vld [vmem:[%s2195_s3 + $0x360] sm:$0xff]  ;;  %v315_v14 = vld [vmem:[%s2195_s3 + $0x258] sm:$0xff] }
  0x1b   :  { %496 = vmatpush.msra.mxu3 %v292_v47  ;;  %474 = vmatpush.msra.mxu2 %v275_v49  ;;  %v365_v13 = vld [vmem:[%s2195_s3 + $0x3e8] sm:$0xff]  ;;  %v332_v15 = vld [vmem:[%s2195_s3 + $0x2e0] sm:$0xff]  ;;  %v347_v16 = vld [vmem:[%s2195_s3 + $0x358] sm:$0xff] }
  0x1c   :  { %451 = vmatpush.msra.mxu1 %v259_v50  ;;  %429 = vmatpush.msra.mxu0 %v242_v52  ;;  %v364_v17 = vld [vmem:[%s2195_s3 + $0x3e0] sm:$0xff]  ;;  %v314_v18 = vld [vmem:[%s2195_s3 + $0x250] sm:$0xff]  ;;  %v331_v19 = vld [vmem:[%s2195_s3 + $0x2d8] sm:$0xff] }
  0x1d   :  { %497 = vmatpush.msra.mxu3 %v291_v51  ;;  %475 = vmatpush.msra.mxu2 %v274_v53  ;;  %v346_v20 = vld [vmem:[%s2195_s3 + $0x350] sm:$0xff]  ;;  %v363_v21 = vld [vmem:[%s2195_s3 + $0x3d8] sm:$0xff]  ;;  %v313_v22 = vld [vmem:[%s2195_s3 + $0x248] sm:$0xff] }
  0x1e   :  { %452 = vmatpush.msra.mxu1 %v258_v54  ;;  %430 = vmatpush.msra.mxu0 %v241_v56  ;;  %v330_v23 = vld [vmem:[%s2195_s3 + $0x2d0] sm:$0xff]  ;;  %v345_v24 = vld [vmem:[%s2195_s3 + $0x348] sm:$0xff]  ;;  %v312_v26 = vld [vmem:[%s2195_s3 + $0x240] sm:$0xff] }
  0x1f   :  { %498 = vmatpush.msra.mxu3 %v290_v55  ;;  %476 = vmatpush.msra.mxu2 %v273_v57  ;;  %v362_v25 = vld [vmem:[%s2195_s3 + $0x3d0] sm:$0xff]  ;;  %v329_v27 = vld [vmem:[%s2195_s3 + $0x2c8] sm:$0xff]  ;;  %v344_v28 = vld [vmem:[%s2195_s3 + $0x340] sm:$0xff] }
  0x20   :  { %453 = vmatpush.msra.mxu1 %v257_v58  ;;  %431 = vmatpush.msra.mxu0 %v240_v60  ;;  %v361_v29 = vld [vmem:[%s2195_s3 + $0x3c8] sm:$0xff]  ;;  %v311_v30 = vld [vmem:[%s2195_s3 + $0x238] sm:$0xff]  ;;  %v328_v31 = vld [vmem:[%s2195_s3 + $0x2c0] sm:$0xff] }
  0x21   :  { %499 = vmatpush.msra.mxu3 %v289_v59  ;;  %477 = vmatpush.msra.mxu2 %v272_v61  ;;  %v343_v32 = vld [vmem:[%s2195_s3 + $0x338] sm:$0xff]  ;;  %v360_v33 = vld [vmem:[%s2195_s3 + $0x3c0] sm:$0xff]  ;;  %v310_v34 = vld [vmem:[%s2195_s3 + $0x230] sm:$0xff] }
  0x22   :  { %508 = vmatpush.msrb.mxu0 %v319_v62  ;;  %454 = vmatpush.msra.mxu1 %v256_v0  ;;  %v327_v35 = vld [vmem:[%s2195_s3 + $0x2b8] sm:$0xff]  ;;  %v342_v36 = vld [vmem:[%s2195_s3 + $0x330] sm:$0xff]  ;;  %v309_v38 = vld [vmem:[%s2195_s3 + $0x228] sm:$0xff] }
  0x23   :  { %554 = vmatpush.msrb.mxu2 %v351_v63  ;;  %500 = vmatpush.msra.mxu3 %v288_v1  ;;  %v359_v37 = vld [vmem:[%s2195_s3 + $0x3b8] sm:$0xff]  ;;  %v326_v39 = vld [vmem:[%s2195_s3 + $0x2b0] sm:$0xff]  ;;  %v341_v40 = vld [vmem:[%s2195_s3 + $0x328] sm:$0xff] }
  0x24   :  { %509 = vmatpush.msrb.mxu0 %v318_v2  ;;  %531 = vmatpush.msrb.mxu1 %v335_v3  ;;  %v358_v41 = vld [vmem:[%s2195_s3 + $0x3b0] sm:$0xff]  ;;  %v308_v42 = vld [vmem:[%s2195_s3 + $0x220] sm:$0xff]  ;;  %v325_v43 = vld [vmem:[%s2195_s3 + $0x2a8] sm:$0xff] }
  0x25   :  { %555 = vmatpush.msrb.mxu2 %v350_v4  ;;  %577 = vmatpush.msrb.mxu3 %v367_v5  ;;  %v340_v44 = vld [vmem:[%s2195_s3 + $0x320] sm:$0xff]  ;;  %v357_v45 = vld [vmem:[%s2195_s3 + $0x3a8] sm:$0xff]  ;;  %v220_v46 = vld [vmem:[%s2196_s1 + $0x10] sm:$0xff] }
  0x26   :  { %510 = vmatpush.msrb.mxu0 %v317_v6  ;;  %532 = vmatpush.msrb.mxu1 %v334_v7  ;;  %v307_v47 = vld [vmem:[%s2195_s3 + $0x218] sm:$0xff]  ;;  %v324_v48 = vld [vmem:[%s2195_s3 + $0x2a0] sm:$0xff]  ;;  %v306_v53 = vld [vmem:[%s2195_s3 + $0x210] sm:$0xff] }
  0x27   :  { %556 = vmatpush.msrb.mxu2 %v349_v8  ;;  %578 = vmatpush.msrb.mxu3 %v366_v9  ;;  %v339_v49 = vld [vmem:[%s2195_s3 + $0x318] sm:$0xff]  ;;  %v356_v50 = vld [vmem:[%s2195_s3 + $0x3a0] sm:$0xff]  ;;  %v338_v55 = vld [vmem:[%s2195_s3 + $0x310] sm:$0xff] }
  0x28   :  { %511 = vmatpush.msrb.mxu0 %v316_v10  ;;  %533 = vmatpush.msrb.mxu1 %v333_v11  ;;  %v218_v51 = vld [vmem:[%s2196_s1] sm:$0xff]  ;;  %v221_v52 = vld [vmem:[%s2196_s1 + $0x18] sm:$0xff]  ;;  %v219_v57 = vld [vmem:[%s2196_s1 + $0x8] sm:$0xff] }
  0x29   :  { %557 = vmatpush.msrb.mxu2 %v348_v12  ;;  %579 = vmatpush.msrb.mxu3 %v365_v13  ;;  %v323_v54 = vld [vmem:[%s2195_s3 + $0x298] sm:$0xff]  ;;  %v305_v58 = vld [vmem:[%s2195_s3 + $0x208] sm:$0xff]  ;;  %v322_v59 = vld [vmem:[%s2195_s3 + $0x290] sm:$0xff] }
  0x2a   :  { %512 = vmatpush.msrb.mxu0 %v315_v14  ;;  %534 = vmatpush.msrb.mxu1 %v332_v15  ;;  %v355_v56 = vld [vmem:[%s2195_s3 + $0x398] sm:$0xff]  ;;  %v337_v60 = vld [vmem:[%s2195_s3 + $0x308] sm:$0xff]  ;;  %v354_v61 = vld [vmem:[%s2195_s3 + $0x390] sm:$0xff] }
  0x2b   :  { %558 = vmatpush.msrb.mxu2 %v347_v16  ;;  %580 = vmatpush.msrb.mxu3 %v364_v17  ;;  %v304_v62 = vld [vmem:[%s2195_s3 + $0x200] sm:$0xff]  ;;  %v321_v63 = vld [vmem:[%s2195_s3 + $0x288] sm:$0xff]  ;;  %v383_v3 = vld [vmem:[%s2195_s3 + $0x478] sm:$0xff] }
  0x2c   :  { %513 = vmatpush.msrb.mxu0 %v314_v18  ;;  %535 = vmatpush.msrb.mxu1 %v331_v19  ;;  %v336_v0 = vld [vmem:[%s2195_s3 + $0x300] sm:$0xff]  ;;  %v353_v1 = vld [vmem:[%s2195_s3 + $0x388] sm:$0xff]  ;;  %v415_v4 = vld [vmem:[%s2195_s3 + $0x578] sm:$0xff] }
  0x2d   :  { %559 = vmatpush.msrb.mxu2 %v346_v20  ;;  %581 = vmatpush.msrb.mxu3 %v363_v21  ;;  %v231_v2 = vld [vmem:[%s2196_s1 + $0x68] sm:$0xff]  ;;  %v320_v5 = vld [vmem:[%s2195_s3 + $0x280] sm:$0xff]  ;;  %v229_v7 = vld [vmem:[%s2196_s1 + $0x58] sm:$0xff] }
  0x2e   :  { %514 = vmatpush.msrb.mxu0 %v313_v22  ;;  %536 = vmatpush.msrb.mxu1 %v330_v23  ;;  %v352_v6 = vld [vmem:[%s2195_s3 + $0x380] sm:$0xff]  ;;  %v232_v8 = vld [vmem:[%s2196_s1 + $0x70] sm:$0xff]  ;;  %v399_v10 = vld [vmem:[%s2195_s3 + $0x4f8] sm:$0xff] }
  0x2f   :  { %560 = vmatpush.msrb.mxu2 %v345_v24  ;;  %582 = vmatpush.msrb.mxu3 %v362_v25  ;;  %v382_v9 = vld [vmem:[%s2195_s3 + $0x470] sm:$0xff]  ;;  %v57_v12 = vld [vmem:[%s2197_s2 + $0x78] sm:$0xff]  ;;  %v230_v13 = vld [vmem:[%s2196_s1 + $0x60] sm:$0xff] }
  0x30   :  { %515 = vmatpush.msrb.mxu0 %v312_v26  ;;  %537 = vmatpush.msrb.mxu1 %v329_v27  ;;  %v414_v11 = vld [vmem:[%s2195_s3 + $0x570] sm:$0xff]  ;;  %v381_v14 = vld [vmem:[%s2195_s3 + $0x468] sm:$0xff]  ;;  %v380_v18 = vld [vmem:[%s2195_s3 + $0x460] sm:$0xff] }
  0x31   :  { %561 = vmatpush.msrb.mxu2 %v344_v28  ;;  %583 = vmatpush.msrb.mxu3 %v361_v29  ;;  %v398_v15 = vld [vmem:[%s2195_s3 + $0x4f0] sm:$0xff]  ;;  %v413_v16 = vld [vmem:[%s2195_s3 + $0x568] sm:$0xff]  ;;  %v412_v20 = vld [vmem:[%s2195_s3 + $0x560] sm:$0xff] }
  0x32   :  { %516 = vmatpush.msrb.mxu0 %v311_v30  ;;  %538 = vmatpush.msrb.mxu1 %v328_v31  ;;  %v56_v17 = vld [vmem:[%s2197_s2 + $0x70] sm:$0xff]  ;;  %v397_v19 = vld [vmem:[%s2195_s3 + $0x4e8] sm:$0xff]  ;;  %v379_v23 = vld [vmem:[%s2195_s3 + $0x458] sm:$0xff] }
  0x33   :  { %562 = vmatpush.msrb.mxu2 %v343_v32  ;;  %584 = vmatpush.msrb.mxu3 %v360_v33  ;;  %v55_v21 = vld [vmem:[%s2197_s2 + $0x68] sm:$0xff]  ;;  %v224_v22 = vld [vmem:[%s2196_s1 + $0x30] sm:$0xff]  ;;  %v396_v24 = vld [vmem:[%s2195_s3 + $0x4e0] sm:$0xff] }
  0x34   :  { %517 = vmatpush.msrb.mxu0 %v310_v34  ;;  %539 = vmatpush.msrb.mxu1 %v327_v35  ;;  %v411_v25 = vld [vmem:[%s2195_s3 + $0x558] sm:$0xff]  ;;  %v54_v26 = vld [vmem:[%s2197_s2 + $0x60] sm:$0xff]  ;;  %v378_v29 = vld [vmem:[%s2195_s3 + $0x450] sm:$0xff] }
  0x35   :  { %563 = vmatpush.msrb.mxu2 %v342_v36  ;;  %585 = vmatpush.msrb.mxu3 %v359_v37  ;;  %v222_v27 = vld [vmem:[%s2196_s1 + $0x20] sm:$0xff]  ;;  %v225_v28 = vld [vmem:[%s2196_s1 + $0x38] sm:$0xff]  ;;  %v410_v31 = vld [vmem:[%s2195_s3 + $0x550] sm:$0xff] }
  0x36   :  { %518 = vmatpush.msrb.mxu0 %v309_v38  ;;  %540 = vmatpush.msrb.mxu1 %v326_v39  ;;  %v395_v30 = vld [vmem:[%s2195_s3 + $0x4d8] sm:$0xff]  ;;  %v223_v33 = vld [vmem:[%s2196_s1 + $0x28] sm:$0xff]  ;;  %v394_v35 = vld [vmem:[%s2195_s3 + $0x4d0] sm:$0xff] }
  0x37   :  { %564 = vmatpush.msrb.mxu2 %v341_v40  ;;  %586 = vmatpush.msrb.mxu3 %v358_v41  ;;  %v53_v32 = vld [vmem:[%s2197_s2 + $0x58] sm:$0xff]  ;;  %v377_v34 = vld [vmem:[%s2195_s3 + $0x448] sm:$0xff]  ;;  %v52_v37 = vld [vmem:[%s2197_s2 + $0x50] sm:$0xff] }
  0x38   :  { %519 = vmatpush.msrb.mxu0 %v308_v42  ;;  %541 = vmatpush.msrb.mxu1 %v325_v43  ;;  %v409_v36 = vld [vmem:[%s2195_s3 + $0x548] sm:$0xff]  ;;  %v376_v38 = vld [vmem:[%s2195_s3 + $0x440] sm:$0xff]  ;;  %v375_v42 = vld [vmem:[%s2195_s3 + $0x438] sm:$0xff] }
  0x39   :  { %565 = vmatpush.msrb.mxu2 %v340_v44  ;;  %587 = vmatpush.msrb.mxu3 %v357_v45  ;;  %v393_v39 = vld [vmem:[%s2195_s3 + $0x4c8] sm:$0xff]  ;;  %v408_v40 = vld [vmem:[%s2195_s3 + $0x540] sm:$0xff]  ;;  %v407_v44 = vld [vmem:[%s2195_s3 + $0x538] sm:$0xff] }
  0x3a   :  { %478 = vmatmul.f32.vlgmr.msra.gmra.mxu2 %v220_v46  ;;  %520 = vmatpush.msrb.mxu0 %v307_v47  ;;  %v51_v41 = vld [vmem:[%s2197_s2 + $0x48] sm:$0xff]  ;;  %v392_v43 = vld [vmem:[%s2195_s3 + $0x4c0] sm:$0xff]  ;;  %v374_v46 = vld [vmem:[%s2195_s3 + $0x430] sm:$0xff] }
  0x3b   :  { %542 = vmatpush.msrb.mxu1 %v324_v48  ;;  %566 = vmatpush.msrb.mxu2 %v339_v49  ;;  %v50_v45 = vld [vmem:[%s2197_s2 + $0x40] sm:$0xff]  ;;  %v391_v47 = vld [vmem:[%s2195_s3 + $0x4b8] sm:$0xff]  ;;  %v406_v48 = vld [vmem:[%s2195_s3 + $0x530] sm:$0xff] }
  0x3c   :  { %588 = vmatpush.msrb.mxu3 %v356_v50  ;;  %432 = vmatmul.f32.vlgmr.msra.gmra.mxu0 %v218_v51  ;;  %v49_v49 = vld [vmem:[%s2197_s2 + $0x38] sm:$0xff]  ;;  %v373_v50 = vld [vmem:[%s2195_s3 + $0x428] sm:$0xff]  ;;  %v390_v51 = vld [vmem:[%s2195_s3 + $0x4b0] sm:$0xff] }
  0x3d   :  { %501 = vmatmul.f32.vlgmr.msra.gmra.mxu3 %v221_v52  ;;  %521 = vmatpush.msrb.mxu0 %v306_v53  ;;  %v405_v52 = vld [vmem:[%s2195_s3 + $0x528] sm:$0xff]  ;;  %v48_v53 = vld [vmem:[%s2197_s2 + $0x30] sm:$0xff] }
  0x3e   :  { %543 = vmatpush.msrb.mxu1 %v323_v54  ;;  %567 = vmatpush.msrb.mxu2 %v338_v55  ;;  %v372_v54 = vld [vmem:[%s2195_s3 + $0x420] sm:$0xff]  ;;  %v389_v55 = vld [vmem:[%s2195_s3 + $0x4a8] sm:$0xff] }
  0x3f   :  { %589 = vmatpush.msrb.mxu3 %v355_v56  ;;  %455 = vmatmul.f32.vlgmr.msra.gmra.mxu1 %v219_v57  ;;  %v404_v56 = vld [vmem:[%s2195_s3 + $0x520] sm:$0xff]  ;;  %v47_v57 = vld [vmem:[%s2197_s2 + $0x28] sm:$0xff] }
  0x40   :  { %522 = vmatpush.msrb.mxu0 %v305_v58  ;;  %544 = vmatpush.msrb.mxu1 %v322_v59  ;;  %v233_v58 = vld [vmem:[%s2196_s1 + $0x78] sm:$0xff]  ;;  %v235_v59 = vld [vmem:[%s2196_s1 + $0x88] sm:$0xff] }
  0x41   :  { %568 = vmatpush.msrb.mxu2 %v337_v60  ;;  %590 = vmatpush.msrb.mxu3 %v354_v61  ;;  %v371_v60 = vld [vmem:[%s2195_s3 + $0x418] sm:$0xff]  ;;  %v388_v61 = vld [vmem:[%s2195_s3 + $0x4a0] sm:$0xff] }
  0x42   :  { %523 = vmatpush.msrb.mxu0 %v304_v62  ;;  %545 = vmatpush.msrb.mxu1 %v321_v63  ;;  %v403_v62 = vld [vmem:[%s2195_s3 + $0x518] sm:$0xff]  ;;  %v46_v63 = vld [vmem:[%s2197_s2 + $0x20] sm:$0xff] }
  0x43   :  { %569 = vmatpush.msrb.mxu2 %v336_v0  ;;  %591 = vmatpush.msrb.mxu3 %v353_v1  ;;  %v234_v0 = vld [vmem:[%s2196_s1 + $0x80] sm:$0xff]  ;;  %v236_v1 = vld [vmem:[%s2196_s1 + $0x90] sm:$0xff] }
  0x44   :  { %481 = vmatmul.f32.gmra.mxu2 %v231_v2  ;;  %600 = vmatpush.msra.mxu0 %v383_v3  ;;  %v370_v2 = vld [vmem:[%s2195_s3 + $0x410] sm:$0xff]  ;;  %v387_v3 = vld [vmem:[%s2195_s3 + $0x498] sm:$0xff] }
  0x45   :  { %646 = vmatpush.msra.mxu2 %v415_v4  ;;  %546 = vmatpush.msrb.mxu1 %v320_v5  ;;  %v402_v4 = vld [vmem:[%s2195_s3 + $0x510] sm:$0xff]  ;;  %v45_v5 = vld [vmem:[%s2197_s2 + $0x18] sm:$0xff] }
  0x46   :  { %592 = vmatpush.msrb.mxu3 %v352_v6  ;;  %435 = vmatmul.f32.gmra.mxu0 %v229_v7  ;;  %v369_v6 = vld [vmem:[%s2195_s3 + $0x408] sm:$0xff]  ;;  %v386_v7 = vld [vmem:[%s2195_s3 + $0x490] sm:$0xff] }
  0x47   :  { %504 = vmatmul.f32.gmra.mxu3 %v232_v8  ;;  %601 = vmatpush.msra.mxu0 %v382_v9  ;;  %v401_v8 = vld [vmem:[%s2195_s3 + $0x508] sm:$0xff]  ;;  %v44_v9 = vld [vmem:[%s2197_s2 + $0x10] sm:$0xff] }
  0x48   :  { %623 = vmatpush.msra.mxu1 %v399_v10  ;;  %647 = vmatpush.msra.mxu2 %v414_v11  ;;  %v368_v10 = vld [vmem:[%s2195_s3 + $0x400] sm:$0xff]  ;;  %v385_v11 = vld [vmem:[%s2195_s3 + $0x488] sm:$0xff] }
  0x49   :  { %669 = vmatpush.msra.mxu3 %v57_v12  ;;  %458 = vmatmul.f32.gmra.mxu1 %v230_v13  ;;  %v400_v12 = vld [vmem:[%s2195_s3 + $0x500] sm:$0xff]  ;;  %v43_v13 = vld [vmem:[%s2197_s2 + $0x8] sm:$0xff] }
  0x4a   :  { %602 = vmatpush.msra.mxu0 %v381_v14  ;;  %624 = vmatpush.msra.mxu1 %v398_v15  ;;  %v226_v14 = vld [vmem:[%s2196_s1 + $0x40] sm:$0xff]  ;;  %v228_v15 = vld [vmem:[%s2196_s1 + $0x50] sm:$0xff] }
  0x4b   :  { %648 = vmatpush.msra.mxu2 %v413_v16  ;;  %670 = vmatpush.msra.mxu3 %v56_v17  ;;  %v73_v16 = vld [vmem:[%s2197_s2 + $0xf8] sm:$0xff] }
  0x4c   :  { %603 = vmatpush.msra.mxu0 %v380_v18  ;;  %625 = vmatpush.msra.mxu1 %v397_v19  ;;  %v105_v17 = vld [vmem:[%s2197_s2 + $0x1f8] sm:$0xff]  ;;  %v384_v18 = vld [vmem:[%s2195_s3 + $0x480] sm:$0xff] }
  0x4d   :  { %649 = vmatpush.msra.mxu2 %v412_v20  ;;  %671 = vmatpush.msra.mxu3 %v55_v21  ;;  %v42_v19 = vld [vmem:[%s2197_s2] sm:$0xff]  ;;  %v227_v20 = vld [vmem:[%s2196_s1 + $0x48] sm:$0xff] }
  0x4e   :  { %570 = vmatmul.f32.vlgmr.msrb.gmra.mxu2 %v224_v22  ;;  %604 = vmatpush.msra.mxu0 %v379_v23  ;;  %v20_v21 = vld [vmem:[%s2198_s0] sm:$0xff]  ;;  %v72_v22 = vld [vmem:[%s2197_s2 + $0xf0] sm:$0xff]  ;;  %v89_v23 = vld [vmem:[%s2197_s2 + $0x178] sm:$0xff] }
  0x4f   :  { %626 = vmatpush.msra.mxu1 %v396_v24  ;;  %650 = vmatpush.msra.mxu2 %v411_v25  ;;  %v104_v24 = vld [vmem:[%s2197_s2 + $0x1f0] sm:$0xff]  ;;  %v121_v25 = vld [vmem:[%s2197_s2 + $0x278] sm:$0xff] }
  0x50   :  { %672 = vmatpush.msra.mxu3 %v54_v26  ;;  %524 = vmatmul.f32.vlgmr.msrb.gmra.mxu0 %v222_v27  ;;  %v71_v26 = vld [vmem:[%s2197_s2 + $0xe8] sm:$0xff]  ;;  %v88_v27 = vld [vmem:[%s2197_s2 + $0x170] sm:$0xff] }
  0x51   :  { %593 = vmatmul.f32.vlgmr.msrb.gmra.mxu3 %v225_v28  ;;  %605 = vmatpush.msra.mxu0 %v378_v29  ;;  %v103_v28 = vld [vmem:[%s2197_s2 + $0x1e8] sm:$0xff]  ;;  %v120_v29 = vld [vmem:[%s2197_s2 + $0x270] sm:$0xff] }
  0x52   :  { %627 = vmatpush.msra.mxu1 %v395_v30  ;;  %651 = vmatpush.msra.mxu2 %v410_v31  ;;  %v70_v30 = vld [vmem:[%s2197_s2 + $0xe0] sm:$0xff]  ;;  %v87_v31 = vld [vmem:[%s2197_s2 + $0x168] sm:$0xff] }
  0x53   :  { %673 = vmatpush.msra.mxu3 %v53_v32  ;;  %547 = vmatmul.f32.vlgmr.msrb.gmra.mxu1 %v223_v33  ;;  %v102_v32 = vld [vmem:[%s2197_s2 + $0x1e0] sm:$0xff]  ;;  %v119_v33 = vld [vmem:[%s2197_s2 + $0x268] sm:$0xff] }
  0x54   :  { %606 = vmatpush.msra.mxu0 %v377_v34  ;;  %628 = vmatpush.msra.mxu1 %v394_v35  ;;  %v239_v34 = vld [vmem:[%s2196_s1 + $0xa8] sm:$0xff]  ;;  %v69_v35 = vld [vmem:[%s2197_s2 + $0xd8] sm:$0xff] }
  0x55   :  { %652 = vmatpush.msra.mxu2 %v409_v36  ;;  %674 = vmatpush.msra.mxu3 %v52_v37  ;;  %v86_v36 = vld [vmem:[%s2197_s2 + $0x160] sm:$0xff]  ;;  %v101_v37 = vld [vmem:[%s2197_s2 + $0x1d8] sm:$0xff] }
  0x56   :  { %607 = vmatpush.msra.mxu0 %v376_v38  ;;  %629 = vmatpush.msra.mxu1 %v393_v39  ;;  %v118_v38 = vld [vmem:[%s2197_s2 + $0x260] sm:$0xff]  ;;  %v237_v39 = vld [vmem:[%s2196_s1 + $0x98] sm:$0xff] }
  0x57   :  { %653 = vmatpush.msra.mxu2 %v408_v40  ;;  %675 = vmatpush.msra.mxu3 %v51_v41  ;;  %v31_v40 = vld [vmem:[%s2198_s0 + $0x58] sm:$0xff]  ;;  %v68_v41 = vld [vmem:[%s2197_s2 + $0xd0] sm:$0xff] }
  0x58   :  { %608 = vmatpush.msra.mxu0 %v375_v42  ;;  %630 = vmatpush.msra.mxu1 %v392_v43  ;;  %v85_v42 = vld [vmem:[%s2197_s2 + $0x158] sm:$0xff]  ;;  %v100_v43 = vld [vmem:[%s2197_s2 + $0x1d0] sm:$0xff] }
  0x59   :  { %654 = vmatpush.msra.mxu2 %v407_v44  ;;  %676 = vmatpush.msra.mxu3 %v50_v45  ;;  %v117_v44 = vld [vmem:[%s2197_s2 + $0x258] sm:$0xff]  ;;  %v238_v45 = vld [vmem:[%s2196_s1 + $0xa0] sm:$0xff] }
  0x5a   :  { %609 = vmatpush.msra.mxu0 %v374_v46  ;;  %631 = vmatpush.msra.mxu1 %v391_v47  ;;  %v67_v46 = vld [vmem:[%s2197_s2 + $0xc8] sm:$0xff]  ;;  %v84_v47 = vld [vmem:[%s2197_s2 + $0x150] sm:$0xff] }
  0x5b   :  { %655 = vmatpush.msra.mxu2 %v406_v48  ;;  %677 = vmatpush.msra.mxu3 %v49_v49  ;;  %v99_v48 = vld [vmem:[%s2197_s2 + $0x1c8] sm:$0xff]  ;;  %v116_v49 = vld [vmem:[%s2197_s2 + $0x250] sm:$0xff] }
  0x5c   :  { %610 = vmatpush.msra.mxu0 %v373_v50  ;;  %632 = vmatpush.msra.mxu1 %v390_v51  ;;  %v66_v50 = vld [vmem:[%s2197_s2 + $0xc0] sm:$0xff]  ;;  %v83_v51 = vld [vmem:[%s2197_s2 + $0x148] sm:$0xff] }
  0x5d   :  { %656 = vmatpush.msra.mxu2 %v405_v52  ;;  %678 = vmatpush.msra.mxu3 %v48_v53  ;;  %v98_v52 = vld [vmem:[%s2197_s2 + $0x1c0] sm:$0xff]  ;;  %v115_v53 = vld [vmem:[%s2197_s2 + $0x248] sm:$0xff] }
  0x5e   :  { %611 = vmatpush.msra.mxu0 %v372_v54  ;;  %633 = vmatpush.msra.mxu1 %v389_v55  ;;  %v65_v54 = vld [vmem:[%s2197_s2 + $0xb8] sm:$0xff]  ;;  %v82_v55 = vld [vmem:[%s2197_s2 + $0x140] sm:$0xff] }
  0x5f   :  { %657 = vmatpush.msra.mxu2 %v404_v56  ;;  %679 = vmatpush.msra.mxu3 %v47_v57  ;;  %v97_v56 = vld [vmem:[%s2197_s2 + $0x1b8] sm:$0xff]  ;;  %v114_v57 = vld [vmem:[%s2197_s2 + $0x240] sm:$0xff] }
  0x60   :  { %527 = vmatmul.f32.gmra.mxu0 %v233_v58  ;;  %573 = vmatmul.f32.gmra.mxu2 %v235_v59  ;;  %v64_v58 = vld [vmem:[%s2197_s2 + $0xb0] sm:$0xff]  ;;  %v81_v59 = vld [vmem:[%s2197_s2 + $0x138] sm:$0xff] }
  0x61   :  { %612 = vmatpush.msra.mxu0 %v371_v60  ;;  %634 = vmatpush.msra.mxu1 %v388_v61  ;;  %v96_v60 = vld [vmem:[%s2197_s2 + $0x1b0] sm:$0xff]  ;;  %v113_v61 = vld [vmem:[%s2197_s2 + $0x238] sm:$0xff] }
  0x62   :  { %658 = vmatpush.msra.mxu2 %v403_v62  ;;  %680 = vmatpush.msra.mxu3 %v46_v63  ;;  %v63_v62 = vld [vmem:[%s2197_s2 + $0xa8] sm:$0xff]  ;;  %v80_v63 = vld [vmem:[%s2197_s2 + $0x130] sm:$0xff] }
  0x63   :  { %550 = vmatmul.f32.gmra.mxu1 %v234_v0  ;;  %596 = vmatmul.f32.gmra.mxu3 %v236_v1  ;;  %v95_v0 = vld [vmem:[%s2197_s2 + $0x1a8] sm:$0xff]  ;;  %v112_v1 = vld [vmem:[%s2197_s2 + $0x230] sm:$0xff] }
  0x64   :  { %613 = vmatpush.msra.mxu0 %v370_v2  ;;  %635 = vmatpush.msra.mxu1 %v387_v3  ;;  %v62_v2 = vld [vmem:[%s2197_s2 + $0xa0] sm:$0xff]  ;;  %v79_v3 = vld [vmem:[%s2197_s2 + $0x128] sm:$0xff] }
  0x65   :  { %659 = vmatpush.msra.mxu2 %v402_v4  ;;  %681 = vmatpush.msra.mxu3 %v45_v5  ;;  %v94_v4 = vld [vmem:[%s2197_s2 + $0x1a0] sm:$0xff]  ;;  %v111_v5 = vld [vmem:[%s2197_s2 + $0x228] sm:$0xff] }
  0x66   :  { %614 = vmatpush.msra.mxu0 %v369_v6  ;;  %636 = vmatpush.msra.mxu1 %v386_v7  ;;  %v61_v6 = vld [vmem:[%s2197_s2 + $0x98] sm:$0xff]  ;;  %v78_v7 = vld [vmem:[%s2197_s2 + $0x120] sm:$0xff] }
  0x67   :  { %660 = vmatpush.msra.mxu2 %v401_v8  ;;  %682 = vmatpush.msra.mxu3 %v44_v9  ;;  %v93_v8 = vld [vmem:[%s2197_s2 + $0x198] sm:$0xff]  ;;  %v110_v9 = vld [vmem:[%s2197_s2 + $0x220] sm:$0xff] }
  0x68   :  { %615 = vmatpush.msra.mxu0 %v368_v10  ;;  %637 = vmatpush.msra.mxu1 %v385_v11  ;;  %v60_v10 = vld [vmem:[%s2197_s2 + $0x90] sm:$0xff]  ;;  %v77_v11 = vld [vmem:[%s2197_s2 + $0x118] sm:$0xff] }
  0x69   :  { %661 = vmatpush.msra.mxu2 %v400_v12  ;;  %683 = vmatpush.msra.mxu3 %v43_v13  ;;  %v92_v12 = vld [vmem:[%s2197_s2 + $0x190] sm:$0xff]  ;;  %v109_v13 = vld [vmem:[%s2197_s2 + $0x218] sm:$0xff] }
  0x6a   :  { %616 = vmatmul.f32.vlgmr.msra.gmra.mxu0 %v226_v14  ;;  %662 = vmatmul.f32.vlgmr.msra.gmra.mxu2 %v228_v15  ;;  %v59_v14 = vld [vmem:[%s2197_s2 + $0x88] sm:$0xff]  ;;  %v76_v15 = vld [vmem:[%s2197_s2 + $0x110] sm:$0xff] }
  0x6b   :  { %692 = vmatpush.msrb.mxu0 %v73_v16  ;;  %738 = vmatpush.msrb.mxu2 %v105_v17  ;;  %v91_v16 = vld [vmem:[%s2197_s2 + $0x188] sm:$0xff]  ;;  %v108_v17 = vld [vmem:[%s2197_s2 + $0x210] sm:$0xff] }
  0x6c   :  { %638 = vmatpush.msra.mxu1 %v384_v18  ;;  %684 = vmatpush.msra.mxu3 %v42_v19  ;;  %v58_v18 = vld [vmem:[%s2197_s2 + $0x80] sm:$0xff]  ;;  %v75_v19 = vld [vmem:[%s2197_s2 + $0x108] sm:$0xff] }
  0x6d   :  { %639 = vmatmul.f32.vlgmr.msra.gmra.mxu1 %v227_v20  ;;  %685 = vmatmul.f32.vlgmr.msra.gmra.mxu3 %v20_v21  ;;  %v90_v20 = vld [vmem:[%s2197_s2 + $0x180] sm:$0xff]  ;;  %v107_v21 = vld [vmem:[%s2197_s2 + $0x208] sm:$0xff] }
  0x6e   :  { %693 = vmatpush.msrb.mxu0 %v72_v22  ;;  %715 = vmatpush.msrb.mxu1 %v89_v23  ;;  %v21_v22 = vld [vmem:[%s2198_s0 + $0x8] sm:$0xff]  ;;  %v23_v23 = vld [vmem:[%s2198_s0 + $0x18] sm:$0xff] }
  0x6f   :  { %739 = vmatpush.msrb.mxu2 %v104_v24  ;;  %761 = vmatpush.msrb.mxu3 %v121_v25  ;;  %v137_v24 = vld [vmem:[%s2197_s2 + $0x2f8] sm:$0xff] }
  0x70   :  { %694 = vmatpush.msrb.mxu0 %v71_v26  ;;  %716 = vmatpush.msrb.mxu1 %v88_v27  ;;  %v169_v25 = vld [vmem:[%s2197_s2 + $0x3f8] sm:$0xff]  ;;  %v74_v26 = vld [vmem:[%s2197_s2 + $0x100] sm:$0xff] }
  0x71   :  { %740 = vmatpush.msrb.mxu2 %v103_v28  ;;  %762 = vmatpush.msrb.mxu3 %v120_v29  ;;  %v106_v27 = vld [vmem:[%s2197_s2 + $0x200] sm:$0xff]  ;;  %v22_v28 = vld [vmem:[%s2198_s0 + $0x10] sm:$0xff] }
  0x72   :  { %695 = vmatpush.msrb.mxu0 %v70_v30  ;;  %717 = vmatpush.msrb.mxu1 %v87_v31  ;;  %v24_v29 = vld [vmem:[%s2198_s0 + $0x20] sm:$0xff]  ;;  %v136_v30 = vld [vmem:[%s2197_s2 + $0x2f0] sm:$0xff]  ;;  %v153_v31 = vld [vmem:[%s2197_s2 + $0x378] sm:$0xff] }
  0x73   :  { %741 = vmatpush.msrb.mxu2 %v102_v32  ;;  %763 = vmatpush.msrb.mxu3 %v119_v33  ;;  %v168_v32 = vld [vmem:[%s2197_s2 + $0x3f0] sm:$0xff]  ;;  %v185_v33 = vld [vmem:[%s2197_s2 + $0x478] sm:$0xff] }
  0x74   :  { %665 = vmatmul.f32.gmra.mxu2 %v239_v34  ;;  %696 = vmatpush.msrb.mxu0 %v69_v35  ;;  %v135_v34 = vld [vmem:[%s2197_s2 + $0x2e8] sm:$0xff]  ;;  %v152_v35 = vld [vmem:[%s2197_s2 + $0x370] sm:$0xff] }
  0x75   :  { %718 = vmatpush.msrb.mxu1 %v86_v36  ;;  %742 = vmatpush.msrb.mxu2 %v101_v37  ;;  %v167_v36 = vld [vmem:[%s2197_s2 + $0x3e8] sm:$0xff]  ;;  %v184_v37 = vld [vmem:[%s2197_s2 + $0x470] sm:$0xff] }
  0x76   :  { %764 = vmatpush.msrb.mxu3 %v118_v38  ;;  %619 = vmatmul.f32.gmra.mxu0 %v237_v39  ;;  %v134_v38 = vld [vmem:[%s2197_s2 + $0x2e0] sm:$0xff]  ;;  %v151_v39 = vld [vmem:[%s2197_s2 + $0x368] sm:$0xff] }
  0x77   :  { %688 = vmatmul.f32.gmra.mxu3 %v31_v40  ;;  %697 = vmatpush.msrb.mxu0 %v68_v41  ;;  %v166_v40 = vld [vmem:[%s2197_s2 + $0x3e0] sm:$0xff]  ;;  %v183_v41 = vld [vmem:[%s2197_s2 + $0x468] sm:$0xff] }
  0x78   :  { %719 = vmatpush.msrb.mxu1 %v85_v42  ;;  %743 = vmatpush.msrb.mxu2 %v100_v43  ;;  %v32_v42 = vld [vmem:[%s2198_s0 + $0x60] sm:$0xff]  ;;  %v34_v43 = vld [vmem:[%s2198_s0 + $0x70] sm:$0xff] }
  0x79   :  { %765 = vmatpush.msrb.mxu3 %v117_v44  ;;  %642 = vmatmul.f32.gmra.mxu1 %v238_v45  ;;  %v133_v44 = vld [vmem:[%s2197_s2 + $0x2d8] sm:$0xff]  ;;  %v150_v45 = vld [vmem:[%s2197_s2 + $0x360] sm:$0xff] }
  0x7a   :  { %698 = vmatpush.msrb.mxu0 %v67_v46  ;;  %720 = vmatpush.msrb.mxu1 %v84_v47  ;;  %v165_v46 = vld [vmem:[%s2197_s2 + $0x3d8] sm:$0xff]  ;;  %v182_v47 = vld [vmem:[%s2197_s2 + $0x460] sm:$0xff] }
  0x7b   :  { %744 = vmatpush.msrb.mxu2 %v99_v48  ;;  %766 = vmatpush.msrb.mxu3 %v116_v49  ;;  %v33_v48 = vld [vmem:[%s2198_s0 + $0x68] sm:$0xff]  ;;  %v35_v49 = vld [vmem:[%s2198_s0 + $0x78] sm:$0xff] }
  0x7c   :  { %699 = vmatpush.msrb.mxu0 %v66_v50  ;;  %721 = vmatpush.msrb.mxu1 %v83_v51  ;;  %v132_v50 = vld [vmem:[%s2197_s2 + $0x2d0] sm:$0xff]  ;;  %v149_v51 = vld [vmem:[%s2197_s2 + $0x358] sm:$0xff] }
  0x7d   :  { %745 = vmatpush.msrb.mxu2 %v98_v52  ;;  %767 = vmatpush.msrb.mxu3 %v115_v53  ;;  %v164_v52 = vld [vmem:[%s2197_s2 + $0x3d0] sm:$0xff]  ;;  %v181_v53 = vld [vmem:[%s2197_s2 + $0x458] sm:$0xff] }
  0x7e   :  { %700 = vmatpush.msrb.mxu0 %v65_v54  ;;  %722 = vmatpush.msrb.mxu1 %v82_v55  ;;  %v131_v54 = vld [vmem:[%s2197_s2 + $0x2c8] sm:$0xff]  ;;  %v148_v55 = vld [vmem:[%s2197_s2 + $0x350] sm:$0xff] }
  0x7f   :  { %746 = vmatpush.msrb.mxu2 %v97_v56  ;;  %768 = vmatpush.msrb.mxu3 %v114_v57  ;;  %v163_v56 = vld [vmem:[%s2197_s2 + $0x3c8] sm:$0xff]  ;;  %v180_v57 = vld [vmem:[%s2197_s2 + $0x450] sm:$0xff] }
  0x80   :  { %701 = vmatpush.msrb.mxu0 %v64_v58  ;;  %723 = vmatpush.msrb.mxu1 %v81_v59  ;;  %v130_v58 = vld [vmem:[%s2197_s2 + $0x2c0] sm:$0xff]  ;;  %v147_v59 = vld [vmem:[%s2197_s2 + $0x348] sm:$0xff] }
  0x81   :  { %747 = vmatpush.msrb.mxu2 %v96_v60  ;;  %769 = vmatpush.msrb.mxu3 %v113_v61  ;;  %v162_v60 = vld [vmem:[%s2197_s2 + $0x3c0] sm:$0xff]  ;;  %v179_v61 = vld [vmem:[%s2197_s2 + $0x448] sm:$0xff] }
  0x82   :  { %702 = vmatpush.msrb.mxu0 %v63_v62  ;;  %724 = vmatpush.msrb.mxu1 %v80_v63  ;;  %v129_v62 = vld [vmem:[%s2197_s2 + $0x2b8] sm:$0xff]  ;;  %v146_v63 = vld [vmem:[%s2197_s2 + $0x340] sm:$0xff] }
  0x83   :  { %748 = vmatpush.msrb.mxu2 %v95_v0  ;;  %770 = vmatpush.msrb.mxu3 %v112_v1  ;;  %v161_v0 = vld [vmem:[%s2197_s2 + $0x3b8] sm:$0xff]  ;;  %v178_v1 = vld [vmem:[%s2197_s2 + $0x440] sm:$0xff] }
  0x84   :  { %703 = vmatpush.msrb.mxu0 %v62_v2  ;;  %725 = vmatpush.msrb.mxu1 %v79_v3  ;;  %v128_v2 = vld [vmem:[%s2197_s2 + $0x2b0] sm:$0xff]  ;;  %v145_v3 = vld [vmem:[%s2197_s2 + $0x338] sm:$0xff] }
  0x85   :  { %749 = vmatpush.msrb.mxu2 %v94_v4  ;;  %771 = vmatpush.msrb.mxu3 %v111_v5  ;;  %v160_v4 = vld [vmem:[%s2197_s2 + $0x3b0] sm:$0xff]  ;;  %v177_v5 = vld [vmem:[%s2197_s2 + $0x438] sm:$0xff] }
  0x86   :  { %704 = vmatpush.msrb.mxu0 %v61_v6  ;;  %726 = vmatpush.msrb.mxu1 %v78_v7  ;;  %v127_v6 = vld [vmem:[%s2197_s2 + $0x2a8] sm:$0xff]  ;;  %v144_v7 = vld [vmem:[%s2197_s2 + $0x330] sm:$0xff] }
  0x87   :  { %750 = vmatpush.msrb.mxu2 %v93_v8  ;;  %772 = vmatpush.msrb.mxu3 %v110_v9  ;;  %v159_v8 = vld [vmem:[%s2197_s2 + $0x3a8] sm:$0xff]  ;;  %v176_v9 = vld [vmem:[%s2197_s2 + $0x430] sm:$0xff] }
  0x88   :  { %705 = vmatpush.msrb.mxu0 %v60_v10  ;;  %727 = vmatpush.msrb.mxu1 %v77_v11  ;;  %v126_v10 = vld [vmem:[%s2197_s2 + $0x2a0] sm:$0xff]  ;;  %v143_v11 = vld [vmem:[%s2197_s2 + $0x328] sm:$0xff] }
  0x89   :  { %751 = vmatpush.msrb.mxu2 %v92_v12  ;;  %773 = vmatpush.msrb.mxu3 %v109_v13  ;;  %v158_v12 = vld [vmem:[%s2197_s2 + $0x3a0] sm:$0xff]  ;;  %v175_v13 = vld [vmem:[%s2197_s2 + $0x428] sm:$0xff] }
  0x8a   :  { %706 = vmatpush.msrb.mxu0 %v59_v14  ;;  %728 = vmatpush.msrb.mxu1 %v76_v15  ;;  %v125_v14 = vld [vmem:[%s2197_s2 + $0x298] sm:$0xff]  ;;  %v142_v15 = vld [vmem:[%s2197_s2 + $0x320] sm:$0xff] }
  0x8b   :  { %752 = vmatpush.msrb.mxu2 %v91_v16  ;;  %774 = vmatpush.msrb.mxu3 %v108_v17  ;;  %v157_v16 = vld [vmem:[%s2197_s2 + $0x398] sm:$0xff]  ;;  %v174_v17 = vld [vmem:[%s2197_s2 + $0x420] sm:$0xff] }
  0x8c   :  { %707 = vmatpush.msrb.mxu0 %v58_v18  ;;  %729 = vmatpush.msrb.mxu1 %v75_v19  ;;  %v124_v18 = vld [vmem:[%s2197_s2 + $0x290] sm:$0xff]  ;;  %v141_v19 = vld [vmem:[%s2197_s2 + $0x318] sm:$0xff] }
  0x8d   :  { %753 = vmatpush.msrb.mxu2 %v90_v20  ;;  %775 = vmatpush.msrb.mxu3 %v107_v21  ;;  %v156_v20 = vld [vmem:[%s2197_s2 + $0x390] sm:$0xff]  ;;  %v173_v21 = vld [vmem:[%s2197_s2 + $0x418] sm:$0xff] }
  0x8e   :  { %708 = vmatmul.f32.vlgmr.msrb.gmra.mxu0 %v21_v22  ;;  %754 = vmatmul.f32.vlgmr.msrb.gmra.mxu2 %v23_v23  ;;  %v123_v22 = vld [vmem:[%s2197_s2 + $0x288] sm:$0xff]  ;;  %v140_v23 = vld [vmem:[%s2197_s2 + $0x310] sm:$0xff] }
  0x8f   :  { %784 = vmatpush.msra.mxu0 %v137_v24  ;;  %830 = vmatpush.msra.mxu2 %v169_v25  ;;  %v155_v24 = vld [vmem:[%s2197_s2 + $0x388] sm:$0xff]  ;;  %v172_v25 = vld [vmem:[%s2197_s2 + $0x410] sm:$0xff] }
  0x90   :  { %730 = vmatpush.msrb.mxu1 %v74_v26  ;;  %776 = vmatpush.msrb.mxu3 %v106_v27  ;;  %v122_v26 = vld [vmem:[%s2197_s2 + $0x280] sm:$0xff]  ;;  %v139_v27 = vld [vmem:[%s2197_s2 + $0x308] sm:$0xff] }
  0x91   :  { %731 = vmatmul.f32.vlgmr.msrb.gmra.mxu1 %v22_v28  ;;  %777 = vmatmul.f32.vlgmr.msrb.gmra.mxu3 %v24_v29  ;;  %v154_v28 = vld [vmem:[%s2197_s2 + $0x380] sm:$0xff]  ;;  %v171_v29 = vld [vmem:[%s2197_s2 + $0x408] sm:$0xff] }
  0x92   :  { %785 = vmatpush.msra.mxu0 %v136_v30  ;;  %807 = vmatpush.msra.mxu1 %v153_v31  ;;  %v25_v30 = vld [vmem:[%s2198_s0 + $0x28] sm:$0xff]  ;;  %v27_v31 = vld [vmem:[%s2198_s0 + $0x38] sm:$0xff] }
  0x93   :  { %831 = vmatpush.msra.mxu2 %v168_v32  ;;  %853 = vmatpush.msra.mxu3 %v185_v33  ;;  %v201_v32 = vld [vmem:[%s2197_s2 + $0x4f8] sm:$0xff]  ;;  %v138_v33 = vld [vmem:[%s2197_s2 + $0x300] sm:$0xff] }
  0x94   :  { %786 = vmatpush.msra.mxu0 %v135_v34  ;;  %808 = vmatpush.msra.mxu1 %v152_v35  ;;  %v170_v34 = vld [vmem:[%s2197_s2 + $0x400] sm:$0xff]  ;;  %v26_v35 = vld [vmem:[%s2198_s0 + $0x30] sm:$0xff] }
  0x95   :  { %832 = vmatpush.msra.mxu2 %v167_v36  ;;  %854 = vmatpush.msra.mxu3 %v184_v37  ;;  %v28_v36 = vld [vmem:[%s2198_s0 + $0x40] sm:$0xff]  ;;  %v200_v37 = vld [vmem:[%s2197_s2 + $0x4f0] sm:$0xff] }
  0x96   :  { %787 = vmatpush.msra.mxu0 %v134_v38  ;;  %809 = vmatpush.msra.mxu1 %v151_v39  ;;  %v217_v38 = vld [vmem:[%s2197_s2 + $0x578] sm:$0xff]  ;;  %v199_v39 = vld [vmem:[%s2197_s2 + $0x4e8] sm:$0xff] }
  0x97   :  { %833 = vmatpush.msra.mxu2 %v166_v40  ;;  %855 = vmatpush.msra.mxu3 %v183_v41  ;;  %v216_v40 = vld [vmem:[%s2197_s2 + $0x570] sm:$0xff]  ;;  %v198_v41 = vld [vmem:[%s2197_s2 + $0x4e0] sm:$0xff] }
  0x98   :  { %711 = vmatmul.f32.gmra.mxu0 %v32_v42  ;;  %757 = vmatmul.f32.gmra.mxu2 %v34_v43  ;;  %v215_v42 = vld [vmem:[%s2197_s2 + $0x568] sm:$0xff]  ;;  %v36_v43 = vld [vmem:[%s2198_s0 + $0x80] sm:$0xff] }
  0x99   :  { %788 = vmatpush.msra.mxu0 %v133_v44  ;;  %810 = vmatpush.msra.mxu1 %v150_v45  ;;  %v38_v44 = vld [vmem:[%s2198_s0 + $0x90] sm:$0xff]  ;;  %v197_v45 = vld [vmem:[%s2197_s2 + $0x4d8] sm:$0xff] }
  0x9a   :  { %834 = vmatpush.msra.mxu2 %v165_v46  ;;  %856 = vmatpush.msra.mxu3 %v182_v47  ;;  %v214_v46 = vld [vmem:[%s2197_s2 + $0x560] sm:$0xff]  ;;  %v37_v47 = vld [vmem:[%s2198_s0 + $0x88] sm:$0xff] }
  0x9b   :  { %734 = vmatmul.f32.gmra.mxu1 %v33_v48  ;;  %780 = vmatmul.f32.gmra.mxu3 %v35_v49  ;;  %v39_v48 = vld [vmem:[%s2198_s0 + $0x98] sm:$0xff]  ;;  %v196_v49 = vld [vmem:[%s2197_s2 + $0x4d0] sm:$0xff] }
  0x9c   :  { %789 = vmatpush.msra.mxu0 %v132_v50  ;;  %811 = vmatpush.msra.mxu1 %v149_v51  ;;  %v213_v50 = vld [vmem:[%s2197_s2 + $0x558] sm:$0xff]  ;;  %v195_v51 = vld [vmem:[%s2197_s2 + $0x4c8] sm:$0xff] }
  0x9d   :  { %835 = vmatpush.msra.mxu2 %v164_v52  ;;  %857 = vmatpush.msra.mxu3 %v181_v53  ;;  %v212_v52 = vld [vmem:[%s2197_s2 + $0x550] sm:$0xff]  ;;  %v194_v53 = vld [vmem:[%s2197_s2 + $0x4c0] sm:$0xff] }
  0x9e   :  { %790 = vmatpush.msra.mxu0 %v131_v54  ;;  %812 = vmatpush.msra.mxu1 %v148_v55  ;;  %v211_v54 = vld [vmem:[%s2197_s2 + $0x548] sm:$0xff]  ;;  %v193_v55 = vld [vmem:[%s2197_s2 + $0x4b8] sm:$0xff] }
  0x9f   :  { %836 = vmatpush.msra.mxu2 %v163_v56  ;;  %858 = vmatpush.msra.mxu3 %v180_v57  ;;  %v210_v56 = vld [vmem:[%s2197_s2 + $0x540] sm:$0xff]  ;;  %v192_v57 = vld [vmem:[%s2197_s2 + $0x4b0] sm:$0xff] }
  0xa0   :  { %791 = vmatpush.msra.mxu0 %v130_v58  ;;  %813 = vmatpush.msra.mxu1 %v147_v59  ;;  %v209_v58 = vld [vmem:[%s2197_s2 + $0x538] sm:$0xff]  ;;  %v191_v59 = vld [vmem:[%s2197_s2 + $0x4a8] sm:$0xff] }
  0xa1   :  { %837 = vmatpush.msra.mxu2 %v162_v60  ;;  %859 = vmatpush.msra.mxu3 %v179_v61  ;;  %v208_v60 = vld [vmem:[%s2197_s2 + $0x530] sm:$0xff]  ;;  %v190_v61 = vld [vmem:[%s2197_s2 + $0x4a0] sm:$0xff] }
  0xa2   :  { %792 = vmatpush.msra.mxu0 %v129_v62  ;;  %814 = vmatpush.msra.mxu1 %v146_v63  ;;  %v207_v62 = vld [vmem:[%s2197_s2 + $0x528] sm:$0xff]  ;;  %v189_v63 = vld [vmem:[%s2197_s2 + $0x498] sm:$0xff] }
  0xa3   :  { %838 = vmatpush.msra.mxu2 %v161_v0  ;;  %860 = vmatpush.msra.mxu3 %v178_v1  ;;  %v206_v0 = vld [vmem:[%s2197_s2 + $0x520] sm:$0xff]  ;;  %v188_v1 = vld [vmem:[%s2197_s2 + $0x490] sm:$0xff] }
  0xa4   :  { %793 = vmatpush.msra.mxu0 %v128_v2  ;;  %815 = vmatpush.msra.mxu1 %v145_v3  ;;  %v205_v2 = vld [vmem:[%s2197_s2 + $0x518] sm:$0xff]  ;;  %v187_v3 = vld [vmem:[%s2197_s2 + $0x488] sm:$0xff] }
  0xa5   :  { %839 = vmatpush.msra.mxu2 %v160_v4  ;;  %861 = vmatpush.msra.mxu3 %v177_v5  ;;  %v204_v4 = vld [vmem:[%s2197_s2 + $0x510] sm:$0xff]  ;;  %v186_v5 = vld [vmem:[%s2197_s2 + $0x480] sm:$0xff] }
  0xa6   :  { %794 = vmatpush.msra.mxu0 %v127_v6  ;;  %816 = vmatpush.msra.mxu1 %v144_v7  ;;  %v203_v6 = vld [vmem:[%s2197_s2 + $0x508] sm:$0xff] }
  0xa7   :  { %840 = vmatpush.msra.mxu2 %v159_v8  ;;  %862 = vmatpush.msra.mxu3 %v176_v9  ;;  %v29_v7 = vld [vmem:[%s2198_s0 + $0x48] sm:$0xff]  ;;  %v40_v8 = vld [vmem:[%s2198_s0 + $0xa0] sm:$0xff] }
  0xa8   :  { %795 = vmatpush.msra.mxu0 %v126_v10  ;;  %817 = vmatpush.msra.mxu1 %v143_v11  ;;  %v202_v9 = vld [vmem:[%s2197_s2 + $0x500] sm:$0xff]  ;;  %v30_v10 = vld [vmem:[%s2198_s0 + $0x50] sm:$0xff]  ;;  %v41_v11 = vld [vmem:[%s2198_s0 + $0xa8] sm:$0xff] }
  0xa9   :  { %841 = vmatpush.msra.mxu2 %v158_v12  ;;  %863 = vmatpush.msra.mxu3 %v175_v13 }
  0xaa   :  { %796 = vmatpush.msra.mxu0 %v125_v14  ;;  %818 = vmatpush.msra.mxu1 %v142_v15 }
  0xab   :  { %842 = vmatpush.msra.mxu2 %v157_v16  ;;  %864 = vmatpush.msra.mxu3 %v174_v17 }
  0xac   :  { %797 = vmatpush.msra.mxu0 %v124_v18  ;;  %819 = vmatpush.msra.mxu1 %v141_v19 }
  0xad   :  { %843 = vmatpush.msra.mxu2 %v156_v20  ;;  %865 = vmatpush.msra.mxu3 %v173_v21 }
  0xae   :  { %798 = vmatpush.msra.mxu0 %v123_v22  ;;  %820 = vmatpush.msra.mxu1 %v140_v23 }
  0xaf   :  { %844 = vmatpush.msra.mxu2 %v155_v24  ;;  %866 = vmatpush.msra.mxu3 %v172_v25 }
  0xb0   :  { %799 = vmatpush.msra.mxu0 %v122_v26  ;;  %821 = vmatpush.msra.mxu1 %v139_v27 }
  0xb1   :  { %845 = vmatpush.msra.mxu2 %v154_v28  ;;  %867 = vmatpush.msra.mxu3 %v171_v29 }
  0xb2   :  { %800 = vmatmul.f32.vlgmr.msra.gmra.mxu0 %v25_v30  ;;  %846 = vmatmul.f32.vlgmr.msra.gmra.mxu2 %v27_v31 }
  0xb3   :  { %876 = vmatpush.msrb.mxu0 %v201_v32  ;;  %935 = vmatpush.msrb.mxu2 %v201_v32 }
  0xb4   :  { %822 = vmatpush.msra.mxu1 %v138_v33  ;;  %868 = vmatpush.msra.mxu3 %v170_v34 }
  0xb5   :  { %823 = vmatmul.f32.vlgmr.msra.gmra.mxu1 %v26_v35  ;;  %869 = vmatmul.f32.vlgmr.msra.gmra.mxu3 %v28_v36 }
  0xb6   :  { %877 = vmatpush.msrb.mxu0 %v200_v37  ;;  %936 = vmatpush.msrb.mxu2 %v200_v37 }
  0xb7   :  { %899 = vmatpush.msrb.mxu1 %v217_v38  ;;  %951 = vmatpush.msrb.mxu3 %v217_v38 }
  0xb8   :  { %878 = vmatpush.msrb.mxu0 %v199_v39  ;;  %937 = vmatpush.msrb.mxu2 %v199_v39 }
  0xb9   :  { %900 = vmatpush.msrb.mxu1 %v216_v40  ;;  %952 = vmatpush.msrb.mxu3 %v216_v40  ;;  %v433_v12 = vpop.f32.mrf.mxu0 }
  0xba   :  { %879 = vmatpush.msrb.mxu0 %v198_v41  ;;  %938 = vmatpush.msrb.mxu2 %v198_v41 }
  0xbb   :  { %901 = vmatpush.msrb.mxu1 %v215_v42  ;;  %953 = vmatpush.msrb.mxu3 %v215_v42 }
  0xbc   :  { %803 = vmatmul.f32.gmra.mxu0 %v36_v43  ;;  %849 = vmatmul.f32.gmra.mxu2 %v38_v44  ;;  %v456_v13 = vpop.f32.mrf.mxu1 }
  0xbd   :  { %880 = vmatpush.msrb.mxu0 %v197_v45  ;;  %939 = vmatpush.msrb.mxu2 %v197_v45  ;;  %v479_v14 = vpop.f32.mrf.mxu2  ;;  %v457_v25 = vadd.f32 %v456_v13, %v433_v12 }
  0xbe   :  { %902 = vmatpush.msrb.mxu1 %v214_v46  ;;  %954 = vmatpush.msrb.mxu3 %v214_v46 }
  0xbf   :  { %826 = vmatmul.f32.gmra.mxu1 %v37_v47  ;;  %872 = vmatmul.f32.gmra.mxu3 %v39_v48  ;;  %v480_v29 = vadd.f32 %v479_v14, %v457_v25 }
  0xc0   :  { %881 = vmatpush.msrb.mxu0 %v196_v49  ;;  %940 = vmatpush.msrb.mxu2 %v196_v49  ;;  %v502_v15 = vpop.f32.mrf.mxu3 }
  0xc1   :  { %903 = vmatpush.msrb.mxu1 %v213_v50  ;;  %955 = vmatpush.msrb.mxu3 %v213_v50  ;;  %v503_v32 = vadd.f32 %v502_v15, %v480_v29 }
  0xc2   :  { %882 = vmatpush.msrb.mxu0 %v195_v51  ;;  %941 = vmatpush.msrb.mxu2 %v195_v51 }
  0xc3   :  { %904 = vmatpush.msrb.mxu1 %v212_v52  ;;  %956 = vmatpush.msrb.mxu3 %v212_v52  ;;  %v436_v16 = vpop.f32.mrf.mxu0 }
  0xc4   :  { %883 = vmatpush.msrb.mxu0 %v194_v53  ;;  %942 = vmatpush.msrb.mxu2 %v194_v53 }
  0xc5   :  { %905 = vmatpush.msrb.mxu1 %v211_v54  ;;  %957 = vmatpush.msrb.mxu3 %v211_v54 }
  0xc6   :  { %884 = vmatpush.msrb.mxu0 %v193_v55  ;;  %943 = vmatpush.msrb.mxu2 %v193_v55  ;;  %v459_v17 = vpop.f32.mrf.mxu1 }
  0xc7   :  { %906 = vmatpush.msrb.mxu1 %v210_v56  ;;  %958 = vmatpush.msrb.mxu3 %v210_v56  ;;  %v482_v18 = vpop.f32.mrf.mxu2  ;;  %v460_v27 = vadd.f32 %v459_v17, %v436_v16 }
  0xc8   :  { %885 = vmatpush.msrb.mxu0 %v192_v57  ;;  %944 = vmatpush.msrb.mxu2 %v192_v57 }
  0xc9   :  { %907 = vmatpush.msrb.mxu1 %v209_v58  ;;  %959 = vmatpush.msrb.mxu3 %v209_v58  ;;  %v483_v31 = vadd.f32 %v482_v18, %v460_v27  ;;  %v967_v27 = vld [vmem:[%s2199_s4] ss:$0 sm:$0xff] }
  0xca   :  { %886 = vmatpush.msrb.mxu0 %v191_v59  ;;  %945 = vmatpush.msrb.mxu2 %v191_v59  ;;  %v505_v19 = vpop.f32.mrf.mxu3 }
  0xcb   :  { %908 = vmatpush.msrb.mxu1 %v208_v60  ;;  %960 = vmatpush.msrb.mxu3 %v208_v60  ;;  %v506_v34 = vadd.f32 %v505_v19, %v483_v31 }
  0xcc   :  { %887 = vmatpush.msrb.mxu0 %v190_v61  ;;  %946 = vmatpush.msrb.mxu2 %v190_v61 }
  0xcd   :  { %909 = vmatpush.msrb.mxu1 %v207_v62  ;;  %961 = vmatpush.msrb.mxu3 %v207_v62  ;;  %v525_v20 = vpop.f32.mrf.mxu0 }
  0xce   :  { %888 = vmatpush.msrb.mxu0 %v189_v63  ;;  %947 = vmatpush.msrb.mxu2 %v189_v63  ;;  %v526_v36 = vadd.f32 %v525_v20, %v503_v32 }
  0xcf   :  { %910 = vmatpush.msrb.mxu1 %v206_v0  ;;  %962 = vmatpush.msrb.mxu3 %v206_v0 }
  0xd0   :  { %889 = vmatpush.msrb.mxu0 %v188_v1  ;;  %948 = vmatpush.msrb.mxu2 %v188_v1  ;;  %v548_v21 = vpop.f32.mrf.mxu1 }
  0xd1   :  { %911 = vmatpush.msrb.mxu1 %v205_v2  ;;  %963 = vmatpush.msrb.mxu3 %v205_v2  ;;  %v571_v22 = vpop.f32.mrf.mxu2  ;;  %v549_v40 = vadd.f32 %v548_v21, %v526_v36 }
  0xd2   :  { %890 = vmatpush.msrb.mxu0 %v187_v3  ;;  %949 = vmatpush.msrb.mxu2 %v187_v3 }
  0xd3   :  { %912 = vmatpush.msrb.mxu1 %v204_v4  ;;  %964 = vmatpush.msrb.mxu3 %v204_v4  ;;  %v572_v44 = vadd.f32 %v571_v22, %v549_v40 }
  0xd4   :  { %891 = vmatpush.msrb.mxu0 %v186_v5  ;;  %950 = vmatpush.msrb.mxu2 %v186_v5  ;;  %v594_v23 = vpop.f32.mrf.mxu3 }
  0xd5   :  { %913 = vmatpush.msrb.mxu1 %v203_v6  ;;  %965 = vmatpush.msrb.mxu3 %v203_v6  ;;  %v595_v47 = vadd.f32 %v594_v23, %v572_v44 }
  0xd6   :  { %892 = vmatmul.f32.vlgmr.msrb.gmra.mxu0 %v29_v7  ;;  %895 = vmatmul.f32.vlgmr.msrb.gmra.mxu2 %v40_v8 }
  0xd7   :  { %914 = vmatpush.msrb.mxu1 %v202_v9  ;;  %966 = vmatpush.msrb.mxu3 %v202_v9 }
  0xd8   :  { %915 = vmatmul.f32.vlgmr.msrb.gmra.mxu1 %v30_v10  ;;  %918 = vmatmul.f32.vlgmr.msrb.gmra.mxu3 %v41_v11 }
  0xdd   :  { %v528_v24 = vpop.f32.mrf.mxu0 }
  0xde   :  { %v529_v38 = vadd.f32 %v528_v24, %v506_v34 }
  0xe0   :  { %v551_v26 = vpop.f32.mrf.mxu1 }
  0xe1   :  { %v552_v42 = vadd.f32 %v551_v26, %v529_v38 }
  0xe3   :  { %v574_v28 = vpop.f32.mrf.mxu2 }
  0xe4   :  { %v575_v45 = vadd.f32 %v574_v28, %v552_v42 }
  0xe6   :  { %v597_v30 = vpop.f32.mrf.mxu3 }
  0xe7   :  { %v617_v33 = vpop.f32.mrf.mxu0  ;;  %v598_v50 = vadd.f32 %v597_v30, %v575_v45 }
  0xe8   :  { %v618_v51 = vadd.f32 %v617_v33, %v595_v47 }
  0xea   :  { %v640_v35 = vpop.f32.mrf.mxu1 }
  0xeb   :  { %v641_v53 = vadd.f32 %v640_v35, %v618_v51 }
  0xed   :  { %v663_v37 = vpop.f32.mrf.mxu2 }
  0xee   :  { %v664_v56 = vadd.f32 %v663_v37, %v641_v53 }
  0xf0   :  { %v686_v39 = vpop.f32.mrf.mxu3 }
  0xf1   :  { %v687_v60 = vadd.f32 %v686_v39, %v664_v56 }
  0xf3   :  { %v620_v41 = vpop.f32.mrf.mxu0 }
  0xf4   :  { %v621_v54 = vadd.f32 %v620_v41, %v598_v50 }
  0xf6   :  { %v643_v43 = vpop.f32.mrf.mxu1 }
  0xf7   :  { %v666_v46 = vpop.f32.mrf.mxu2  ;;  %v644_v58 = vadd.f32 %v643_v43, %v621_v54 }
  0xf9   :  { %v667_v62 = vadd.f32 %v666_v46, %v644_v58 }
  0xfa   :  { %v689_v48 = vpop.f32.mrf.mxu3 }
  0xfb   :  { %v690_v1 = vadd.f32 %v689_v48, %v667_v62 }
 0x10b   :  { %v709_v49 = vpop.f32.mrf.mxu0 }
 0x10c   :  { %v710_v63 = vadd.f32 %v709_v49, %v687_v60 }
 0x10e   :  { %v732_v52 = vpop.f32.mrf.mxu1 }
 0x10f   :  { %v733_v2 = vadd.f32 %v732_v52, %v710_v63 }
 0x111   :  { %v755_v55 = vpop.f32.mrf.mxu2 }
 0x112   :  { %v756_v5 = vadd.f32 %v755_v55, %v733_v2 }
 0x114   :  { %v778_v57 = vpop.f32.mrf.mxu3 }
 0x115   :  { %v712_v59 = vpop.f32.mrf.mxu0  ;;  %v779_v8 = vadd.f32 %v778_v57, %v756_v5 }
 0x116   :  { %v713_v6 = vadd.f32 %v712_v59, %v690_v1 }
 0x118   :  { %v735_v61 = vpop.f32.mrf.mxu1 }
 0x119   :  { %v736_v9 = vadd.f32 %v735_v61, %v713_v6 }
 0x11b   :  { %v758_v0 = vpop.f32.mrf.mxu2 }
 0x11c   :  { %v759_v11 = vadd.f32 %v758_v0, %v736_v9 }
 0x11e   :  { %v781_v3 = vpop.f32.mrf.mxu3 }
 0x11f   :  { %v782_v15 = vadd.f32 %v781_v3, %v759_v11 }
 0x12f   :  { %v801_v4 = vpop.f32.mrf.mxu0 }
 0x130   :  { %v802_v12 = vadd.f32 %v801_v4, %v779_v8 }
 0x132   :  { %v824_v7 = vpop.f32.mrf.mxu1 }
 0x133   :  { %v825_v16 = vadd.f32 %v824_v7, %v802_v12 }
 0x135   :  { %v847_v10 = vpop.f32.mrf.mxu2 }
 0x136   :  { %v848_v18 = vadd.f32 %v847_v10, %v825_v16 }
 0x138   :  { %v870_v13 = vpop.f32.mrf.mxu3 }
 0x139   :  { %v804_v14 = vpop.f32.mrf.mxu0  ;;  %v871_v21 = vadd.f32 %v870_v13, %v848_v18 }
 0x13a   :  { %v805_v19 = vadd.f32 %v804_v14, %v782_v15 }
 0x13c   :  { %v827_v17 = vpop.f32.mrf.mxu1 }
 0x13d   :  { %v828_v22 = vadd.f32 %v827_v17, %v805_v19 }
 0x13f   :  { %v850_v20 = vpop.f32.mrf.mxu2 }
 0x140   :  { %v851_v25 = vadd.f32 %v850_v20, %v828_v22 }
 0x142   :  { %v873_v23 = vpop.f32.mrf.mxu3 }
 0x143   :  { %v874_v30 = vadd.f32 %v873_v23, %v851_v25 }
 0x153   :  { %v893_v24 = vpop.f32.mrf.mxu0 }
 0x154   :  { %v894_v26 = vadd.f32 %v893_v24, %v871_v21 }
 0x155   :  { %v916_v28 = vpop.f32.mrf.mxu1 }
 0x156   :  { %v917_v29 = vadd.f32 %v916_v28, %v894_v26 }
 0x158   :  { %v926_v31 = vadd.f32 %v967_v27, %v917_v29 }
 0x159   :  { %v896_v32 = vpop.f32.mrf.mxu2 }
 0x15a   :  { %929 = vst.msk [vmem:[%s2200_s5] sm:$0xff] %vm928_vm0, %v926_v31  ;;  %v897_v33 = vadd.f32 %v896_v32, %v874_v30 }
 0x15b   :  { %v919_v34 = vpop.f32.mrf.mxu3 }
 0x15c   :  { %v920_v35 = vadd.f32 %v919_v34, %v897_v33 }
 0x15e   :  { %v927_v36 = vadd.f32 %v967_v27, %v920_v35 }
 0x160   :  { %930 = vst.msk [vmem:[%s2200_s5 + $0x8] sm:$0xff] %vm928_vm0, %v927_v36 }

</bundles_post_ra>
